<compile_context>
chip_gen: v5e
topology: v5e:2x2
jax: 0.10.0
libtpu: 0.0.40
codegen_flags: <defaults>
</compile_context>

<pallas_src>
import jax
import jax.numpy as jnp
from jax.experimental import pallas as pl
from jax.experimental.pallas import tpu as pltpu


def _attribution_kernel(bias_ref, x_ref, o_ref):
    # bias_ref: (N+1, D) f32 -- row 0 = class token, rows 1.. = attr2 + mask*(attr1-attr2)
    # x_ref   : (Bt, N, D)   -- Bt batch elements per grid step
    # o_ref   : (Bt, N+1, D)
    bt = x_ref.shape[0]
    d = x_ref.shape[2]

    bias = bias_ref[...]                                    # (N+1, D) f32
    y = x_ref[...].astype(jnp.float32) + bias[1:, :][None, :, :]   # (Bt, N, D)
    cls = jnp.broadcast_to(bias[0:1, :][None, :, :], (bt, 1, d))   # (Bt, 1, D)

    # Assemble the full output tile in registers; one aligned full-block store.
    o_ref[...] = jnp.concatenate([cls, y], axis=1).astype(o_ref.dtype)


def _pick_batch_tile(B, N, D, itemsize, vmem_budget_bytes=8 << 20):
    """Largest divisor of B whose double-buffered in+out blocks fit the budget,
    while keeping >= 2 grid steps (so v7x's two TensorCores both get work)."""
    per_batch = 2 * ((N * D) + ((N + 1) * D)) * itemsize    # double-buffered in + out
    cap = max(1, vmem_budget_bytes // max(per_batch, 1))
    best = 1
    for cand in range(1, B + 1):
        if B % cand != 0:
            continue
        if cand > cap:
            break
        if B >= 2 and (B // cand) < 2:
            continue
        best = cand
    return best


def attribution_forward(x, mask, source_attribution, class_token):
    """Pallas implementation of Attribution.forward.

    x:                  (B, N, D)
    mask:               (N,)      values in {0, 1}
    source_attribution: (1, 2, D)
    class_token:        (1, 1, D)
    returns:            (B, N+1, D)  (same dtype as x)
    """
    B, N, D = x.shape

    # Hoisted, batch-invariant precompute (tiny: (N+1, D) in f32).
    attr = source_attribution.reshape(2, D).astype(jnp.float32)
    cls = class_token.reshape(1, D).astype(jnp.float32)
    maskc = mask.reshape(N, 1).astype(jnp.float32)
    delta = attr[1:2, :] + maskc * (attr[0:1, :] - attr[1:2, :])   # (N, D)
    bias = jnp.concatenate([cls, delta], axis=0)                    # (N+1, D)

    bt = _pick_batch_tile(B, N, D, jnp.dtype(x.dtype).itemsize)
    grid = (B // bt,)

    grid_spec = pl.GridSpec(
        grid=grid,
        in_specs=[
            pl.BlockSpec((N + 1, D), lambda b: (0, 0)),        # bias (shared, DMA'd once)
            pl.BlockSpec((bt, N, D), lambda b: (b, 0, 0)),     # x (Bt batches per step)
        ],
        out_specs=pl.BlockSpec((bt, N + 1, D), lambda b: (b, 0, 0)),
    )

    out = pl.pallas_call(
        _attribution_kernel,
        out_shape=jax.ShapeDtypeStruct((B, N + 1, D), x.dtype),
        grid_spec=grid_spec,
        compiler_params=pltpu.CompilerParams(
            dimension_semantics=("parallel",),
            vmem_limit_bytes=32 << 20,          # explicit; safe on v5e/v6e/v7x
        ),
    )(bias, x)
    return out


def attribution_reference(x, mask, source_attribution, class_token):
    """Pure-JAX reference mirroring the PyTorch module."""
    B = x.shape[0]
    mask_r = mask.reshape(1, -1, 1).astype(x.dtype)
    attr1 = source_attribution[:, 0, :][:, None, :]
    attr2 = source_attribution[:, 1, :][:, None, :]
    y = x + mask_r * attr1
    y = y + (1.0 - mask_r) * attr2
    cls = jnp.broadcast_to(class_token, (B, 1, x.shape[-1]))
    return jnp.concatenate([cls, y], axis=1).astype(x.dtype)


if __name__ == "__main__":
    key = jax.random.PRNGKey(0)
    k_attr, k_cls, k_x, k_mask = jax.random.split(key, 4)

    B, N, D = 2, 8, 32  # batch, num_patches, embedding_dim

    # Deterministic "parameters" (same shapes as the PyTorch nn.Parameters).
    source_attribution = jax.random.normal(k_attr, (1, 2, D), dtype=jnp.float32)
    class_token = jax.random.normal(k_cls, (1, 1, D), dtype=jnp.float32)

    # Inputs.
    x = jax.random.normal(k_x, (B, N, D), dtype=jnp.float32)
    mask = (jax.random.uniform(k_mask, (N,)) > 0.5).astype(jnp.float32)

    out = attribution_forward(x, mask, source_attribution, class_token)
    out = jax.block_until_ready(out)
    ref = attribution_reference(x, mask, source_attribution, class_token)
    assert out.shape == (B, N + 1, D), out.shape
    assert jnp.allclose(out, ref, atol=1e-5, rtol=1e-5), "mismatch vs reference (B=2)"

    # Second check exercising the multi-batch-per-block path (Bt > 1, grid >= 2).
    B2 = 8
    x2 = jax.random.normal(jax.random.PRNGKey(1), (B2, N, D), dtype=jnp.float32)
    out2 = jax.block_until_ready(
        attribution_forward(x2, mask, source_attribution, class_token))
    ref2 = attribution_reference(x2, mask, source_attribution, class_token)
    assert out2.shape == (B2, N + 1, D), out2.shape
    assert jnp.allclose(out2, ref2, atol=1e-5, rtol=1e-5), "mismatch vs reference (B=8)"

    # TODO(synk): the PyTorch runtime assert `mask in {0,1}` is not enforced in-kernel.
    print("KERNEL_OK")
</pallas_src>

<mosaic_0001>
module attributes {stable_mosaic.version = 11 : i64} {
  func.func @_attribution_kernel(%arg0: i32, %arg1: memref<9x32xf32, #tpu.memory_space<vmem>>, %arg2: memref<1x8x32xf32, #tpu.memory_space<vmem>>, %arg3: memref<1x9x32xf32, #tpu.memory_space<vmem>>) attributes {dimension_semantics = [#tpu.dimension_semantics<parallel>], iteration_bounds = array<i64: 2>, scalar_prefetch = 0 : i64, scratch_operands = 0 : i64, tpu.core_type = #tpu.core_type<tc>, window_params = [{pipeline_mode = #tpu.pipeline_mode<synchronous>, transform_indices = @transform_0, window_bounds = array<i64: 9, 32>}, {transform_indices = @transform_1, window_bounds = array<i64: 1, 8, 32>}, {transform_indices = @transform_2, window_bounds = array<i64: 1, 9, 32>}]} {
    %c0 = arith.constant 0 : index
    %c0_0 = arith.constant 0 : index
    %0 = vector.load %arg1[%c0, %c0_0] : memref<9x32xf32, #tpu.memory_space<vmem>>, vector<9x32xf32>
    %c0_1 = arith.constant 0 : index
    %c0_2 = arith.constant 0 : index
    %c0_3 = arith.constant 0 : index
    %1 = vector.load %arg2[%c0_1, %c0_2, %c0_3] : memref<1x8x32xf32, #tpu.memory_space<vmem>>, vector<1x8x32xf32>
    %2 = vector.extract_strided_slice %0 {offsets = [1, 0], sizes = [8, 32], strides = [1, 1]} : vector<9x32xf32> to vector<8x32xf32>
    %3 = vector.shape_cast %2 : vector<8x32xf32> to vector<1x8x32xf32>
    %4 = arith.addf %1, %3 : vector<1x8x32xf32>
    %5 = vector.extract_strided_slice %0 {offsets = [0, 0], sizes = [1, 32], strides = [1, 1]} : vector<9x32xf32> to vector<1x32xf32>
    %6 = vector.shape_cast %5 : vector<1x32xf32> to vector<1x1x32xf32>
    %7 = tpu.concatenate %6, %4 in 1 : vector<1x1x32xf32>, vector<1x8x32xf32> -> vector<1x9x32xf32>
    %c0_4 = arith.constant 0 : index
    %c0_5 = arith.constant 0 : index
    %c0_6 = arith.constant 0 : index
    %8 = vector.load %arg3[%c0_4, %c0_5, %c0_6] : memref<1x9x32xf32, #tpu.memory_space<vmem>>, vector<1x9x32xf32>
    tpu.vector_store %arg3[%c0_4, %c0_5, %c0_6], %7 {strides = array<i32>} : memref<1x9x32xf32, #tpu.memory_space<vmem>>, vector<1x9x32xf32>,
    return
  }
  func.func @transform_0(%arg0: i32) -> (i32, i32) {
    %c0_i32 = arith.constant 0 : i32
    %c0_i32_0 = arith.constant 0 : i32
    %c0_i32_1 = arith.constant 0 : i32
    return %c0_i32, %c0_i32_0 : i32, i32
  }
  func.func @transform_1(%arg0: i32) -> (i32, i32, i32) {
    %c0_i32 = arith.constant 0 : i32
    %c0_i32_0 = arith.constant 0 : i32
    %c0_i32_1 = arith.constant 0 : i32
    return %arg0, %c0_i32, %c0_i32_0 : i32, i32, i32
  }
  func.func @transform_2(%arg0: i32) -> (i32, i32, i32) {
    %c0_i32 = arith.constant 0 : i32
    %c0_i32_0 = arith.constant 0 : i32
    %c0_i32_1 = arith.constant 0 : i32
    return %arg0, %c0_i32, %c0_i32_0 : i32, i32, i32
  }
}

</mosaic_0001>

<bundles_post_ra>
// kernel: tpu_custom_call.1
= control target key start
LH: loop header
LB: loop body
LE: loop exit
PB: predicated region body
PF: predicated region fallthrough
CT: control target
= control target key end

     0   :  { %7 = vsyncpa [#allocation3], 0  ;;  %s566_s0 = inlined_call_operand.hbm [shape: f32[9,32], index: 0, kind: input, shape index: {}]   ;;  %s567_s1 = inlined_call_operand.hbm [shape: f32[2,8,32], index: 1, kind: input, shape index: {}]   ;;  %s568_s2 = inlined_call_operand.vmem [shape: f32[2,9,32], index: 2, kind: output, shape index: {}]  }
   0x1   :  { %8 = vsyncpa [#allocation5], 0 }
   0x2   :  { %10 = vsyncpa [#allocation5 + $0x1], 0  ;;  %s463_s9 = smov 0   ;;  %s465_s10 = smov 0  }
   0x3   :  { %s467_s11 = smov 0   ;;  %s469_s12 = smov 0  }
   0x4 LB: > { %s105_s15 = sshll.u32 %s566_s0, 4  ;;  %s485_s16 = sadd.s32 4294967295, %s443_s12   ;;  %s443_s12 = sphi %s469_s12, %s575_s12   ;;  %s439_s11 = sphi %s467_s11, %s574_s11   ;;  %s435_s10 = sphi %s465_s10, %s573_s10   ;;  %s431_s9 = sphi %s463_s9, %s572_s9   ;;  %s106_s15 = int_to_ptr.hbm [resolvable:$true] %s105_s15 }
   0x5   : > { %p280_p0 = scmp.ge.s32.totalorder %s443_s12, 1  ;;  %p58_p1 = scmp.eq.s32.totalorder %s485_s16, 0 }
   0x6   : > { %p94_p2 = scmp.lt.s32.totalorder %s443_s12, 3  ;;  %s445_s18 = smov [#allocation2]  }
   0x7   : > { %s107_s19 = sshll.u32 %s445_s18, 4  ;;  %s446_s20 = smov 128   ;;  %s108_s19 = int_to_ptr.vmem [resolvable:$true] %s107_s19 }
   0x8   : > { %p490_p3 = pnand %p280_p0, %p94_p2  ;;  %s447_s21 = smov 8  }
   0x9   : > { %s499_s22 = sadd.s32 1, %s443_s12   ;;  %s44_s24 = sadd.s32 1, %s439_s11 }
   0xa   : > { %p299_p4 = pneg %p490_p3  ;;  %s41_s23 = ssub.s32 %s443_s12, %s499_s22 }
   0xb   : > { %p42_p6 = scmp.eq.s32.totalorder %s41_s23, 0  ;;  %p51_p7 = scmp.ne.s32.totalorder %s439_s11, %s435_s10 }
   0xc   : > { %p300_p5 = pnand %p299_p4, %p58_p1  ;;  %p52_p8 = scmp.eq.s32.totalorder %s443_s12, 0 }
   0xd   : > { %p57_p9 = scmp.ne.s32.totalorder %s435_s10, %s431_s9  ;;  %p308_p12 = scmp.lt.s32.totalorder %s443_s12, 2 }
   0xe   : > { %302 = dma.hbm_to_vmem [thread:$0]  (!%p300_p5), %s106_s15, 256, %s108_s19, [#allocation3], %s446_s20, %s446_s20, %s447_s21  }
   0xf   : > { %s509_s25 = scalar_select %p42_p6, %s439_s11, %s44_s24  }
  0x10   : > { %p53_p10 = por %p52_p8, %p51_p7  ;;  %p513_p11 = por %p58_p1, %p57_p9 }
  0x11   : > { %s121_s27 = sand.u32 1, %s439_s11   ;;  %s284_s29 = sshll.u32 %s443_s12, 3 }
  0x12   : > { %s283_s28 = sshll.u32 %s121_s27, 3  ;;  %s129_s4 = scalar_lea.hbm %s567_s1, %s284_s29 }
  0x13   : > { %s125_s5 = scalar_lea.vmem [#allocation4], %s283_s28  ;;  %s131_s7 = sshll.u32 %s129_s4, 4  ;;  %s132_s7 = int_to_ptr.hbm [resolvable:$true] %s131_s7 }
  0x14   : > { %s133_s6 = sshll.u32 %s125_s5, 4  ;;  %p523_p13 = pnand %p308_p12, %p53_p10  ;;  %s134_s6 = int_to_ptr.vmem [resolvable:$true] %s133_s6 }
  0x15   : > { %s122_s9 = scalar_lea.sflag [#allocation5], %s121_s27  ;;  %s375_s13 = sshra.s32 %s132_s7, 4  ;;  %s376_s13 = int_to_ptr.hbm [resolvable:$true] %s375_s13 }
  0x16   : > { %s377_s14 = scalar_lea.hbm %s376_s13, 8  ;;  %p379_p2 = pneg %p523_p13 }
  0x17   : > { %p378_p0 = scmp.ne.s32.totalorder %s376_s13, %s377_s14  ;;  %s382_s18 = scalar_lea.hbm %s567_s1, 16 }
  0x18   : > { %p383_p6 = scmp.lt.s32.totalorder %s376_s13, %s567_s1  ;;  %p384_p7 = scmp.lt.s32.totalorder %s382_s18, %s377_s14 }
  0x19   : > { %p380_p4 = pnand %p379_p2, %p378_p0 }
  0x1a   : > { %p385_p8 = por %p384_p7, %p383_p6 }
  0x1b   : > { %p381_p5 = pneg %p380_p4 }
  0x1d   : > { %p386_p9 = pnand %p385_p8, %p381_p5 }
  0x1f   : > { %389 = shalt.err (!%p386_p9)
}
  0x20   : > { %306 = dma.hbm_to_vmem [thread:$0]  (!%p523_p13), %s132_s7, 128, %s134_s6, %s122_s9  }
  0x21   : > { %142 = sbr.rel (%p490_p3) target bundleno = 53 (0x35), region = 28 }
  0x26   : > { %422 = dma.done.wait (%p58_p1), [#allocation3], 256  }
  0x27   : > { %424 = vsyncadd (%p58_p1), [#allocation3], 4294967040  ;;  %s149_s21 = sand.u32 1, %s435_s10  }
  0x28   : > { %s287_s23 = sshll.u32 %s149_s21, 3  ;;  %s150_s24 = scalar_lea.sflag [#allocation5], %s149_s21 }
  0x29   : > { %s153_s27 = scalar_lea.vmem [#allocation4], %s287_s23 }
  0x2a   : > { %426 = dma.done.wait (%p513_p11), %s150_s24, 128  }
  0x2b   : > { %428 = vsyncadd (%p513_p11), %s150_s24, 4294967168  ;;  %p175_p3 = scmp.lt.s32.totalorder %s485_s16, 1  ;;  %v180_v0 = vld [vmem:[#allocation2] sm:$0xff]  ;;  %v181_v1 = vld [vmem:[#allocation2 + $0x8] sm:$0x1]  ;;  %vm185_vm0 = vcmask 1046528  }
  0x2c   : > { %v182_v2 = vld [vmem:[%s153_s27] sm:$0xff]  ;;  %v186_v3 = vrot.slane %v180_v0, 1  ;;  %v187_v4 = vrot.slane %v181_v1, 1  ;;  %vm194_vm1 = vcmask 1040384   ;;  %vm198_vm2 = vcmask 253952  }
  0x2d   : > { %s577_s16 = smov (!%p175_p3, %s485_s16), 1  ;;  %vm196_vm3 = vcmask 261120  }
  0x2e   : > { %s292_s17 = sshll.u32 %s577_s16, 4  ;;  %v188_v5 = vsel %vm185_vm0, %v186_v3, %v187_v4 }
  0x2f   : > { %v190_v6 = vadd.f32 %v188_v5, %v182_v2  ;;  %s179_s30 = scalar_lea.vmem %s568_s2, %s292_s17 }
  0x31   : > { %v192_v7 = vrot.slane %v190_v6, 7 }
  0x33   : > { %v195_v8 = vsel %vm194_vm1, %v180_v0, %v192_v7  ;;  %199 = vst.msk [vmem:[%s179_s30 + $0x8] sm:$0x1] %vm198_vm2, %v192_v7 }
  0x34   : > { %197 = vst.msk [vmem:[%s179_s30] sm:$0xff] %vm196_vm3, %v195_v8 }
  0x35 PF: > { %p13_p1 = scmp.ge.s32.totalorder %s499_s22, 4   ;;  %s572_s9 = smov %s435_s10 }
  0x36   : > { %s573_s10 = smov %s439_s11  ;;  %s574_s11 = smov %s509_s25 }
  0x37   : > { %s575_s12 = smov %s499_s22  ;;  %15 = sbr.rel (!%p13_p1) target bundleno = 4 (0x4), region = 73 }
  0x3c   :  { %221 = vsyncpa [#allocation3], 1 }
  0x3d   :  { %223 = vsyncpa [#allocation3 + $0x1], 1 }
  0x3e   :  { %224 = vsyncpa [#allocation5], 1 }
  0x3f   :  { %226 = vsyncpa [#allocation5 + $0x1], 1 }

</bundles_post_ra>
